<compile_context>
chip_gen: v7x
topology: tpu7x:2x2x1
jax: 0.10.0
libtpu: 0.0.40
codegen_flags: <defaults>
</compile_context>

<pallas_src>
import functools

import jax
import jax.numpy as jnp
import numpy as np
from jax.experimental import pallas as pl
from jax.experimental.pallas import tpu as pltpu

COMPUTE_DTYPE = jnp.bfloat16   # MXU-native on v5e/v6e/v7x; accumulation is f32


def _round_up(x, m):
    return (x + m - 1) // m * m


# ----------------------------- Pallas kernel -------------------------------
def _make_conv_kernel(K, Wp, S_out, Cout):
    """Builds the per-image conv kernel.

    x_ref : (Cin, L_in)      bf16   flattened reflect-padded image (+ zero tail)
    w_ref : (K*K, Cout, Cin) bf16   w_ref[kh*K+kw][o, c] = weight[o, c, kh, kw]
    b_ref : (Cout, 1)        f32
    o_ref : (Cout, S_out)    f32    flattened (padded-width) output
    """
    offsets = [kh * Wp + kw for kh in range(K) for kw in range(K)]

    def kernel(x_ref, w_ref, b_ref, o_ref):
        # Accumulator starts at the broadcast bias (f32) -> bias add is free.
        acc = jnp.broadcast_to(b_ref[...], (Cout, S_out)).astype(jnp.float32)
        # Static unrolled loop over the K*K taps; static slice offsets keep
        # the LLO scheduler free to interleave loads and MXU pushes.
        for kk, off in enumerate(offsets):
            window = x_ref[:, pl.ds(off, S_out)]                 # (Cin, S_out)
            acc = acc + jnp.dot(w_ref[kk], window,
                                preferred_element_type=jnp.float32)
        o_ref[...] = jnp.maximum(acc, 0.0)                       # ReLU

    return kernel


def _conv_block_pallas(x_flat, w_k, b_col, *, K, Wp, S_out):
    N, Cin, L_in = x_flat.shape
    KK, Cout, _ = w_k.shape

    kernel = _make_conv_kernel(K, Wp, S_out, Cout)

    grid_spec = pltpu.PrefetchScalarGridSpec(
        num_scalar_prefetch=0,
        grid=(N,),
        in_specs=[
            # One full flattened image per grid step (batch dim squeezed).
            pl.BlockSpec((None, Cin, L_in), lambda n: (n, 0, 0)),
            # Weights / bias are tiny and resident across the whole grid.
            pl.BlockSpec((KK, Cout, Cin), lambda n: (0, 0, 0)),
            pl.BlockSpec((Cout, 1), lambda n: (0, 0)),
        ],
        out_specs=pl.BlockSpec((None, Cout, S_out), lambda n: (n, 0, 0)),
    )
    return pl.pallas_call(
        kernel,
        out_shape=jax.ShapeDtypeStruct((N, Cout, S_out), jnp.float32),
        grid_spec=grid_spec,
        compiler_params=pltpu.CompilerParams(
            dimension_semantics=("parallel",),        # batch shards over TCs
            vmem_limit_bytes=48 * 1024 * 1024,        # headroom on v7x 64 MiB
        ),
    )(x_flat, w_k, b_col)


# ------------------------------ JAX wrapper ---------------------------------
@functools.partial(jax.jit, static_argnames=("kernel_size",))
def conv_block_forward(x_nchw, weight, bias, *, kernel_size):
    """activation(Conv2d(x)) with padding=K//2, padding_mode='reflect', ReLU.

    x_nchw : (N, Cin, H, W)    weight : (Cout, Cin, K, K)    bias : (Cout,)
    Returns (N, Cout, H_out, W_out) float32 (H_out == H, W_out == W for odd K).
    """
    N, Cin, H, W = x_nchw.shape
    Cout, _, K, _ = weight.shape
    pad = kernel_size // 2
    if pad >= H or pad >= W:
        raise ValueError("reflect padding requires pad < H and pad < W")

    Hp, Wp = H + 2 * pad, W + 2 * pad
    H_out, W_out = Hp - K + 1, Wp - K + 1
    S = H_out * Wp                              # flat output length (padded width)
    S_out = _round_up(S, 128)                   # lane-dense output width
    off_max = (K - 1) * Wp + (K - 1)            # largest in-kernel shift
    L_in = _round_up(S_out + off_max, 128)      # flat input length incl. zero tail

    # Reflect pad in native NCHW (matches torch 'reflect'); flatten spatial.
    xp = jnp.pad(x_nchw, ((0, 0), (0, 0), (pad, pad), (pad, pad)), mode="reflect")
    x_flat = xp.reshape(N, Cin, Hp * Wp)
    x_flat = jnp.pad(x_flat, ((0, 0), (0, 0), (0, L_in - Hp * Wp)))
    x_flat = x_flat.astype(COMPUTE_DTYPE)

    # (Cout, Cin, K, K) -> (K, K, Cout, Cin) -> (K*K, Cout, Cin)
    w_k = jnp.transpose(weight, (2, 3, 0, 1)).reshape(K * K, Cout, Cin)
    w_k = w_k.astype(COMPUTE_DTYPE)
    b_col = bias.reshape(Cout, 1).astype(jnp.float32)

    out_wide = _conv_block_pallas(x_flat, w_k, b_col, K=K, Wp=Wp, S_out=S_out)
    # Drop the lane padding and the padded-width garbage columns.
    out = out_wide[:, :, :S].reshape(N, Cout, H_out, Wp)[:, :, :, :W_out]
    return out


# --------------------------- pure-JAX reference -----------------------------
def conv_block_reference(x_nchw, weight, bias, *, kernel_size):
    pad = kernel_size // 2
    xp = jnp.pad(x_nchw, ((0, 0), (0, 0), (pad, pad), (pad, pad)), mode="reflect")
    out = jax.lax.conv_general_dilated(
        xp.astype(jnp.float32), weight.astype(jnp.float32),
        window_strides=(1, 1), padding="VALID",
        dimension_numbers=("NCHW", "OIHW", "NCHW"),
        precision=jax.lax.Precision.HIGHEST)
    out = out + bias.reshape(1, -1, 1, 1)
    return jnp.maximum(out, 0.0)


if __name__ == "__main__":
    # ConvBlock(in_channels=4, out_channels=8, kernel_size=3, activation=nn.ReLU)
    N, Cin, H, W = 2, 4, 16, 16
    Cout, K = 8, 3

    key = jax.random.PRNGKey(0)
    kx, kw, kb = jax.random.split(key, 3)
    x = jax.random.normal(kx, (N, Cin, H, W), dtype=jnp.float32)
    fan_in = Cin * K * K
    bound = 1.0 / np.sqrt(fan_in)
    weight = jax.random.uniform(kw, (Cout, Cin, K, K), jnp.float32,
                                minval=-bound, maxval=bound)
    bias = jax.random.uniform(kb, (Cout,), jnp.float32,
                              minval=-bound, maxval=bound)

    out = conv_block_forward(x, weight, bias, kernel_size=K)
    out = jax.block_until_ready(out)

    # Reference on the same bf16-rounded activations/weights the kernel uses
    # (the kernel accumulates bf16 products exactly in f32 on the MXU).
    x_r = x.astype(COMPUTE_DTYPE).astype(jnp.float32)
    w_r = weight.astype(COMPUTE_DTYPE).astype(jnp.float32)
    ref = conv_block_reference(x_r, w_r, bias, kernel_size=K)
    ref = jax.block_until_ready(ref)

    assert out.shape == (N, Cout, H, W), out.shape
    np.testing.assert_allclose(np.asarray(out), np.asarray(ref),
                               rtol=1e-3, atol=1e-3)
    print("KERNEL_OK")
</pallas_src>

<mosaic_0001>
module attributes {stable_mosaic.version = 11 : i64} {
  func.func @kernel(%arg0: i32, %arg1: memref<1x4x512xbf16, #tpu.memory_space<vmem>>, %arg2: memref<9x8x4xbf16, #tpu.memory_space<vmem>>, %arg3: memref<8x1xf32, #tpu.memory_space<vmem>>, %arg4: memref<1x8x384xf32, #tpu.memory_space<vmem>>) attributes {dimension_semantics = [#tpu.dimension_semantics<parallel>], iteration_bounds = array<i64: 2>, scalar_prefetch = 0 : i64, scratch_operands = 0 : i64, tpu.core_type = #tpu.core_type<tc>, window_params = [{transform_indices = @transform_0, window_bounds = array<i64: 1, 4, 512>}, {pipeline_mode = #tpu.pipeline_mode<synchronous>, transform_indices = @transform_1, window_bounds = array<i64: 9, 8, 4>}, {pipeline_mode = #tpu.pipeline_mode<synchronous>, transform_indices = @transform_2, window_bounds = array<i64: 8, 1>}, {transform_indices = @transform_3, window_bounds = array<i64: 1, 8, 384>}]} {
    %c0 = arith.constant 0 : index
    %c0_0 = arith.constant 0 : index
    %0 = vector.load %arg3[%c0, %c0_0] : memref<8x1xf32, #tpu.memory_space<vmem>>, vector<8x1xf32>
    %1 = vector.shape_cast %0 : vector<8x1xf32> to vector<8x1xf32>
    %2 = vector.broadcast %1 : vector<8x1xf32> to vector<8x384xf32>
    %c0_1 = arith.constant 0 : index
    %c0_2 = arith.constant 0 : index
    %c0_3 = arith.constant 0 : index
    %3 = vector.load %arg1[%c0_1, %c0_2, %c0_3] : memref<1x4x512xbf16, #tpu.memory_space<vmem>>, vector<1x4x384xbf16>
    %4 = vector.shape_cast %3 : vector<1x4x384xbf16> to vector<4x384xbf16>
    %c0_4 = arith.constant 0 : index
    %c0_5 = arith.constant 0 : index
    %c0_6 = arith.constant 0 : index
    %5 = vector.load %arg2[%c0_4, %c0_5, %c0_6] : memref<9x8x4xbf16, #tpu.memory_space<vmem>>, vector<1x8x4xbf16>
    %6 = vector.shape_cast %5 : vector<1x8x4xbf16> to vector<8x4xbf16>
    %cst = arith.constant dense<0.000000e+00> : vector<8x384xf32>
    %7 = tpu.matmul %6, %4, %cst {dimension_numbers = #tpu.dot_dimension_numbers<[1], [0], [0], [1], [0, 0, 1, 1], [], []>} : vector<8x4xbf16>, vector<4x384xbf16>, vector<8x384xf32> -> vector<8x384xf32>
    %8 = arith.addf %2, %7 : vector<8x384xf32>
    %c0_7 = arith.constant 0 : index
    %c0_8 = arith.constant 0 : index
    %c1 = arith.constant 1 : index
    %9 = vector.load %arg1[%c0_7, %c0_8, %c1] : memref<1x4x512xbf16, #tpu.memory_space<vmem>>, vector<1x4x384xbf16>
    %10 = vector.shape_cast %9 : vector<1x4x384xbf16> to vector<4x384xbf16>
    %c1_9 = arith.constant 1 : index
    %c0_10 = arith.constant 0 : index
    %c0_11 = arith.constant 0 : index
    %11 = vector.load %arg2[%c1_9, %c0_10, %c0_11] : memref<9x8x4xbf16, #tpu.memory_space<vmem>>, vector<1x8x4xbf16>
    %12 = vector.shape_cast %11 : vector<1x8x4xbf16> to vector<8x4xbf16>
    %cst_12 = arith.constant dense<0.000000e+00> : vector<8x384xf32>
    %13 = tpu.matmul %12, %10, %cst_12 {dimension_numbers = #tpu.dot_dimension_numbers<[1], [0], [0], [1], [0, 0, 1, 1], [], []>} : vector<8x4xbf16>, vector<4x384xbf16>, vector<8x384xf32> -> vector<8x384xf32>
    %14 = arith.addf %8, %13 : vector<8x384xf32>
    %c0_13 = arith.constant 0 : index
    %c0_14 = arith.constant 0 : index
    %c2 = arith.constant 2 : index
    %15 = vector.load %arg1[%c0_13, %c0_14, %c2] : memref<1x4x512xbf16, #tpu.memory_space<vmem>>, vector<1x4x384xbf16>
    %16 = vector.shape_cast %15 : vector<1x4x384xbf16> to vector<4x384xbf16>
    %c2_15 = arith.constant 2 : index
    %c0_16 = arith.constant 0 : index
    %c0_17 = arith.constant 0 : index
    %17 = vector.load %arg2[%c2_15, %c0_16, %c0_17] : memref<9x8x4xbf16, #tpu.memory_space<vmem>>, vector<1x8x4xbf16>
    %18 = vector.shape_cast %17 : vector<1x8x4xbf16> to vector<8x4xbf16>
    %cst_18 = arith.constant dense<0.000000e+00> : vector<8x384xf32>
    %19 = tpu.matmul %18, %16, %cst_18 {dimension_numbers = #tpu.dot_dimension_numbers<[1], [0], [0], [1], [0, 0, 1, 1], [], []>} : vector<8x4xbf16>, vector<4x384xbf16>, vector<8x384xf32> -> vector<8x384xf32>
    %20 = arith.addf %14, %19 : vector<8x384xf32>
    %c0_19 = arith.constant 0 : index
    %c0_20 = arith.constant 0 : index
    %c18 = arith.constant 18 : index
    %21 = vector.load %arg1[%c0_19, %c0_20, %c18] : memref<1x4x512xbf16, #tpu.memory_space<vmem>>, vector<1x4x384xbf16>
    %22 = vector.shape_cast %21 : vector<1x4x384xbf16> to vector<4x384xbf16>
    %c3 = arith.constant 3 : index
    %c0_21 = arith.constant 0 : index
    %c0_22 = arith.constant 0 : index
    %23 = vector.load %arg2[%c3, %c0_21, %c0_22] : memref<9x8x4xbf16, #tpu.memory_space<vmem>>, vector<1x8x4xbf16>
    %24 = vector.shape_cast %23 : vector<1x8x4xbf16> to vector<8x4xbf16>
    %cst_23 = arith.constant dense<0.000000e+00> : vector<8x384xf32>
    %25 = tpu.matmul %24, %22, %cst_23 {dimension_numbers = #tpu.dot_dimension_numbers<[1], [0], [0], [1], [0, 0, 1, 1], [], []>} : vector<8x4xbf16>, vector<4x384xbf16>, vector<8x384xf32> -> vector<8x384xf32>
    %26 = arith.addf %20, %25 : vector<8x384xf32>
    %c0_24 = arith.constant 0 : index
    %c0_25 = arith.constant 0 : index
    %c19 = arith.constant 19 : index
    %27 = vector.load %arg1[%c0_24, %c0_25, %c19] : memref<1x4x512xbf16, #tpu.memory_space<vmem>>, vector<1x4x384xbf16>
    %28 = vector.shape_cast %27 : vector<1x4x384xbf16> to vector<4x384xbf16>
    %c4 = arith.constant 4 : index
    %c0_26 = arith.constant 0 : index
    %c0_27 = arith.constant 0 : index
    %29 = vector.load %arg2[%c4, %c0_26, %c0_27] : memref<9x8x4xbf16, #tpu.memory_space<vmem>>, vector<1x8x4xbf16>
    %30 = vector.shape_cast %29 : vector<1x8x4xbf16> to vector<8x4xbf16>
    %cst_28 = arith.constant dense<0.000000e+00> : vector<8x384xf32>
    %31 = tpu.matmul %30, %28, %cst_28 {dimension_numbers = #tpu.dot_dimension_numbers<[1], [0], [0], [1], [0, 0, 1, 1], [], []>} : vector<8x4xbf16>, vector<4x384xbf16>, vector<8x384xf32> -> vector<8x384xf32>
    %32 = arith.addf %26, %31 : vector<8x384xf32>
    %c0_29 = arith.constant 0 : index
    %c0_30 = arith.constant 0 : index
    %c20 = arith.constant 20 : index
    %33 = vector.load %arg1[%c0_29, %c0_30, %c20] : memref<1x4x512xbf16, #tpu.memory_space<vmem>>, vector<1x4x384xbf16>
    %34 = vector.shape_cast %33 : vector<1x4x384xbf16> to vector<4x384xbf16>
    %c5 = arith.constant 5 : index
    %c0_31 = arith.constant 0 : index
    %c0_32 = arith.constant 0 : index
    %35 = vector.load %arg2[%c5, %c0_31, %c0_32] : memref<9x8x4xbf16, #tpu.memory_space<vmem>>, vector<1x8x4xbf16>
    %36 = vector.shape_cast %35 : vector<1x8x4xbf16> to vector<8x4xbf16>
    %cst_33 = arith.constant dense<0.000000e+00> : vector<8x384xf32>
    %37 = tpu.matmul %36, %34, %cst_33 {dimension_numbers = #tpu.dot_dimension_numbers<[1], [0], [0], [1], [0, 0, 1, 1], [], []>} : vector<8x4xbf16>, vector<4x384xbf16>, vector<8x384xf32> -> vector<8x384xf32>
    %38 = arith.addf %32, %37 : vector<8x384xf32>
    %c0_34 = arith.constant 0 : index
    %c0_35 = arith.constant 0 : index
    %c36 = arith.constant 36 : index
    %39 = vector.load %arg1[%c0_34, %c0_35, %c36] : memref<1x4x512xbf16, #tpu.memory_space<vmem>>, vector<1x4x384xbf16>
    %40 = vector.shape_cast %39 : vector<1x4x384xbf16> to vector<4x384xbf16>
    %c6 = arith.constant 6 : index
    %c0_36 = arith.constant 0 : index
    %c0_37 = arith.constant 0 : index
    %41 = vector.load %arg2[%c6, %c0_36, %c0_37] : memref<9x8x4xbf16, #tpu.memory_space<vmem>>, vector<1x8x4xbf16>
    %42 = vector.shape_cast %41 : vector<1x8x4xbf16> to vector<8x4xbf16>
    %cst_38 = arith.constant dense<0.000000e+00> : vector<8x384xf32>
    %43 = tpu.matmul %42, %40, %cst_38 {dimension_numbers = #tpu.dot_dimension_numbers<[1], [0], [0], [1], [0, 0, 1, 1], [], []>} : vector<8x4xbf16>, vector<4x384xbf16>, vector<8x384xf32> -> vector<8x384xf32>
    %44 = arith.addf %38, %43 : vector<8x384xf32>
    %c0_39 = arith.constant 0 : index
    %c0_40 = arith.constant 0 : index
    %c37 = arith.constant 37 : index
    %45 = vector.load %arg1[%c0_39, %c0_40, %c37] : memref<1x4x512xbf16, #tpu.memory_space<vmem>>, vector<1x4x384xbf16>
    %46 = vector.shape_cast %45 : vector<1x4x384xbf16> to vector<4x384xbf16>
    %c7 = arith.constant 7 : index
    %c0_41 = arith.constant 0 : index
    %c0_42 = arith.constant 0 : index
    %47 = vector.load %arg2[%c7, %c0_41, %c0_42] : memref<9x8x4xbf16, #tpu.memory_space<vmem>>, vector<1x8x4xbf16>
    %48 = vector.shape_cast %47 : vector<1x8x4xbf16> to vector<8x4xbf16>
    %cst_43 = arith.constant dense<0.000000e+00> : vector<8x384xf32>
    %49 = tpu.matmul %48, %46, %cst_43 {dimension_numbers = #tpu.dot_dimension_numbers<[1], [0], [0], [1], [0, 0, 1, 1], [], []>} : vector<8x4xbf16>, vector<4x384xbf16>, vector<8x384xf32> -> vector<8x384xf32>
    %50 = arith.addf %44, %49 : vector<8x384xf32>
    %c0_44 = arith.constant 0 : index
    %c0_45 = arith.constant 0 : index
    %c38 = arith.constant 38 : index
    %51 = vector.load %arg1[%c0_44, %c0_45, %c38] : memref<1x4x512xbf16, #tpu.memory_space<vmem>>, vector<1x4x384xbf16>
    %52 = vector.shape_cast %51 : vector<1x4x384xbf16> to vector<4x384xbf16>
    %c8 = arith.constant 8 : index
    %c0_46 = arith.constant 0 : index
    %c0_47 = arith.constant 0 : index
    %53 = vector.load %arg2[%c8, %c0_46, %c0_47] : memref<9x8x4xbf16, #tpu.memory_space<vmem>>, vector<1x8x4xbf16>
    %54 = vector.shape_cast %53 : vector<1x8x4xbf16> to vector<8x4xbf16>
    %cst_48 = arith.constant dense<0.000000e+00> : vector<8x384xf32>
    %55 = tpu.matmul %54, %52, %cst_48 {dimension_numbers = #tpu.dot_dimension_numbers<[1], [0], [0], [1], [0, 0, 1, 1], [], []>} : vector<8x4xbf16>, vector<4x384xbf16>, vector<8x384xf32> -> vector<8x384xf32>
    %56 = arith.addf %50, %55 : vector<8x384xf32>
    %cst_49 = arith.constant 0.000000e+00 : f32
    %57 = vector.broadcast %cst_49 : f32 to vector<8x384xf32>
    %58 = arith.maximumf %56, %57 : vector<8x384xf32>
    %c0_50 = arith.constant 0 : index
    %c0_51 = arith.constant 0 : index
    %c0_52 = arith.constant 0 : index
    %59 = vector.load %arg4[%c0_50, %c0_51, %c0_52] : memref<1x8x384xf32, #tpu.memory_space<vmem>>, vector<1x8x384xf32>
    %60 = vector.shape_cast %59 : vector<1x8x384xf32> to vector<8x384xf32>
    %61 = vector.shape_cast %58 : vector<8x384xf32> to vector<1x8x384xf32>
    tpu.vector_store %arg4[%c0_50, %c0_51, %c0_52], %61 {strides = array<i32>} : memref<1x8x384xf32, #tpu.memory_space<vmem>>, vector<1x8x384xf32>,
    return
  }
  func.func @transform_0(%arg0: i32) -> (i32, i32, i32) {
    %c0_i32 = arith.constant 0 : i32
    %c0_i32_0 = arith.constant 0 : i32
    %c0_i32_1 = arith.constant 0 : i32
    return %arg0, %c0_i32, %c0_i32_0 : i32, i32, i32
  }
  func.func @transform_1(%arg0: i32) -> (i32, i32, i32) {
    %c0_i32 = arith.constant 0 : i32
    %c0_i32_0 = arith.constant 0 : i32
    %c0_i32_1 = arith.constant 0 : i32
    %c0_i32_2 = arith.constant 0 : i32
    return %c0_i32, %c0_i32_0, %c0_i32_1 : i32, i32, i32
  }
  func.func @transform_2(%arg0: i32) -> (i32, i32) {
    %c0_i32 = arith.constant 0 : i32
    %c0_i32_0 = arith.constant 0 : i32
    %c0_i32_1 = arith.constant 0 : i32
    return %c0_i32, %c0_i32_0 : i32, i32
  }
  func.func @transform_3(%arg0: i32) -> (i32, i32, i32) {
    %c0_i32 = arith.constant 0 : i32
    %c0_i32_0 = arith.constant 0 : i32
    %c0_i32_1 = arith.constant 0 : i32
    return %arg0, %c0_i32, %c0_i32_0 : i32, i32, i32
  }
}

</mosaic_0001>

<bundles_post_ra>
// kernel: conv_block_forward.1
= control target key start
LH: loop header
LB: loop body
LE: loop exit
PB: predicated region body
PF: predicated region fallthrough
CT: control target
= control target key end

     0   :  { %s1637_s12 = smov 0   ;;  %s1782_s0 = inlined_call_operand.vmem [shape: bf16[2,4,512], index: 0, kind: input, shape index: {}]   ;;  %s1783_s1 = inlined_call_operand.vmem [shape: bf16[9,8,4], index: 1, kind: input, shape index: {}]   ;;  %s1784_s2 = inlined_call_operand.vmem [shape: f32[8,1], index: 2, kind: input, shape index: {}]   ;;  %s1785_s3 = inlined_call_operand.vmem [shape: f32[2,8,384], index: 3, kind: output, shape index: {}]  }
   0x1 LB: > { %s1388_s13 = sadd.s32 4294967295, %s1603_s12   ;;  %p1392_p0 = scmp.ge.s32.totalorder %s1603_s12, 1  ;;  %s1603_s12 = sphi %s1637_s12, %s13_s12  }
   0x2   : > { %p137_p1 = scmp.lt.s32.totalorder %s1603_s12, 3 }
   0x4   : > { %p138_p2 = pnand %p1392_p0, %p137_p1 }
   0x5   : > { %p161_p3 = scmp.lt.s32.totalorder (!%p138_p2), %s1388_s13, 1  ;;  %v185_v0 = vlaneseq (!%p138_p2)  ;;  %v1605_v1 = vmov (!%p138_p2), 1983009808   ;;  %v1606_v3 = vmov (!%p138_p2), 0.0   ;;  %v1607_v5 = vmov (!%p138_p2), 0   ;;  %s1609_s18 = smov (!%p138_p2), 127  }
   0x6   : > { %141 = sbr.rel (%p138_p2) target bundleno = 446 (0x1be), region = 32  ;;  %v183_v2 = vunpack.c.l.s4 (!%p138_p2), %v1605_v1  ;;  %1452 = vmatprep.subr.bf16.mxu1 (!%p138_p2), %v1606_v3  ;;  %243 = vmatprep.mubr.bf16.mxu0 (!%p138_p2), %v1607_v5  ;;  %vm1608_vm0 = vmmov (!%p138_p2), 0   ;;  %vm201_vm1 = vcmask (!%p138_p2), 1041408   ;;  %v179_v21 = vld [vmem:[%s1783_s1] sm:$0xf] (!%p138_p2)  ;;  %vm197_vm2 = vcmask (!%p138_p2), 31744  }
   0x7   : > { %v186_v4 = vshrl.u32 (!%p138_p2), %v185_v0, 7  ;;  %1594 = vset.pattern.permute.xlu0 (!%p138_p2), %v1607_v5  ;;  %1454 = vmatprep.mubr.msk.bf16.mxu1 (!%p138_p2), %vm1608_vm0, %v1606_v3  ;;  %s1610_s21 = smov (!%p138_p2), 126   ;;  %s1611_s22 = smov (!%p138_p2), 110   ;;  %v172_v22 = vld [vmem:[%s1784_s2] sm:$0xff] (!%p138_p2)  ;;  %vm324_vm3 = vcmask (!%p138_p2), 1039360   ;;  %vm453_vm4 = vcmask (!%p138_p2), 1031168  }
   0x8   : > { %v184_v6 = vunpack.c.0.s8 (!%p138_p2), %v183_v2  ;;  %s1612_s23 = smov (!%p138_p2), 109   ;;  %s1613_s24 = smov (!%p138_p2), 108   ;;  %v1399_v31 = vld [vmem:[%s1783_s1 + $0x4] sm:$0xf] (!%p138_p2)  ;;  %vm582_vm5 = vcmask (!%p138_p2), 900096   ;;  %vm711_vm6 = vcmask (!%p138_p2), 891904  }
   0x9   : > { %s1614_s25 = smov (!%p138_p2), 92   ;;  %s1615_s26 = smov (!%p138_p2), 91   ;;  %v1403_v44 = vld [vmem:[%s1783_s1 + $0x8] sm:$0xf] (!%p138_p2)  ;;  %v1407_v58 = vld [vmem:[%s1783_s1 + $0xc] sm:$0xf] (!%p138_p2) }
   0xa   : > { %v187_v7 = vsub.s32 (!%p138_p2), %v184_v6, %v186_v4  ;;  %s1616_s27 = smov (!%p138_p2), 90   ;;  %vm840_vm7 = vcmask (!%p138_p2), 883712   ;;  %vm969_vm8 = vcmask (!%p138_p2), 752640   ;;  %vm1098_vm9 = vcmask (!%p138_p2), 744448  }
   0xb   : > { %vm1227_vm10 = vcmask (!%p138_p2), 736256  }
   0xd   : > { %s1787_s13 = smov (!%p161_p3, %s1388_s13), 1 }
   0xe   : > { %s1433_s14 = sshll.u32 %s1787_s13, 3 }
   0xf   : > { %s165_s17 = scalar_lea.vmem %s1782_s0, %s1433_s14 }
  0x10   : > { %v295_v8 = vld [vmem:[%s165_s17] sm:$0xff] }
  0x11   : > { %v178_v9 = vld [vmem:[%s165_s17] sm:$0x3f]  ;;  %v306_v10 = vrot.slane %v295_v8, %v187_v7  ;;  %v299_v11 = vcombine.high %v295_v8, %v295_v8  ;;  %v1411_v8 = vld [vmem:[%s1783_s1 + $0x10] sm:$0xf] }
  0x12   : > { %v188_v12 = vrot.slane %v178_v9, %v187_v7  ;;  %v181_v13 = vcombine.high %v178_v9, %v178_v9 }
  0x13   : > { %316 = vrot.lane.b32.xlu0 %v306_v10, %s1609_s18  ;;  %v314_v14 = vcombine.high %v306_v10, %v306_v10  ;;  %v313_v15 = vrot.slane %v299_v11, %v187_v7 }
  0x14   : > { %v196_v16 = vcombine.high %v188_v12, %v188_v12  ;;  %v203_v17 = vsel %vm201_vm1, %v188_v12, 0  ;;  %v195_v18 = vrot.slane %v181_v13, %v187_v7 }
  0x15   : > { %320 = vrot.lane.b32.xlu1 %v313_v15, %s1609_s18  ;;  %v315_v19 = vcombine.high %v313_v15, %v313_v15 }
  0x16   : > { %1396 = vmatprep.subr.msk.bf16.mxu0 %vm201_vm1, %v196_v16  ;;  %v209_v20 = vsel %vm201_vm1, %v195_v18, 0 }
  0x17   : > { %212 = vmatpush1.bf16.msra.mxu0 %v203_v17  ;;  %318 = vrot.lane.b32.xlu0 %v314_v14, %s1609_s18 }
  0x18   : > { %1453 = vmatpush3.bf16.msra.mxu1 %v209_v20 }
  0x19   : > { %1458 = vmatprep.subr.bf16.mxu1 %v1606_v3  ;;  %322 = vrot.lane.b32.xlu1 %v315_v19, %s1609_s18 }
  0x1a   : > { %1397 = vmatmul.mubr.msk.bf16.vlgmr.msra.gmra.mrb[0].mxu0 %vm197_vm2, %v179_v21 }
  0x1b   : > { %1455 = vmatmul.mubr.msk.bf16.vlgmr.msra.gmra.mrb[0].mxu1 %vm197_vm2, %v179_v21  ;;  %372 = vmatprep.mubr.bf16.mxu0 %v1607_v5 }
  0x1c   : > { %445 = vrot.lane.b32.xlu0 %v306_v10, %s1610_s21  ;;  %1460 = vmatprep.mubr.msk.bf16.mxu1 %vm1608_vm0, %v1606_v3 }
  0x1d   : > { %447 = vrot.lane.b32.xlu1 %v314_v14, %s1610_s21 }
  0x20   : > { %449 = vrot.lane.b32.xlu0 %v313_v15, %s1610_s21 }
  0x21   : > { %451 = vrot.lane.b32.xlu1 %v315_v19, %s1610_s21  ;;  %s1573_s21 = smul.u32 24, %s1787_s13 }
  0x24   : > { %574 = vrot.lane.b32.xlu0 %v306_v10, %s1611_s22 }
  0x25   : > { %576 = vrot.lane.b32.xlu1 %v314_v14, %s1611_s22 }
  0x28   : > { %578 = vrot.lane.b32.xlu0 %v313_v15, %s1611_s22 }
  0x29   : > { %580 = vrot.lane.b32.xlu1 %v315_v19, %s1611_s22 }
  0x2c   : > { %703 = vrot.lane.b32.xlu0 %v306_v10, %s1612_s23 }
  0x2d   : > { %705 = vrot.lane.b32.xlu1 %v314_v14, %s1612_s23 }
  0x30   : > { %707 = vrot.lane.b32.xlu0 %v313_v15, %s1612_s23 }
  0x31   : > { %709 = vrot.lane.b32.xlu1 %v315_v19, %s1612_s23 }
  0x34   : > { %832 = vrot.lane.b32.xlu0 %v306_v10, %s1613_s24 }
  0x35   : > { %834 = vrot.lane.b32.xlu1 %v314_v14, %s1613_s24 }
  0x38   : > { %836 = vrot.lane.b32.xlu0 %v313_v15, %s1613_s24 }
  0x39   : > { %838 = vrot.lane.b32.xlu1 %v315_v19, %s1613_s24  ;;  %s170_s24 = scalar_lea.vmem %s1785_s3, %s1573_s21 }
  0x3c   : > { %961 = vrot.lane.b32.xlu0 %v306_v10, %s1614_s25 }
  0x3d   : > { %963 = vrot.lane.b32.xlu1 %v314_v14, %s1614_s25 }
  0x40   : > { %965 = vrot.lane.b32.xlu0 %v313_v15, %s1614_s25 }
  0x41   : > { %967 = vrot.lane.b32.xlu1 %v315_v19, %s1614_s25 }
  0x44   : > { %1090 = vrot.lane.b32.xlu0 %v306_v10, %s1615_s26 }
  0x45   : > { %1092 = vrot.lane.b32.xlu1 %v314_v14, %s1615_s26 }
  0x48   : > { %1094 = vrot.lane.b32.xlu0 %v313_v15, %s1615_s26 }
  0x49   : > { %1096 = vrot.lane.b32.xlu1 %v315_v19, %s1615_s26 }
  0x4c   : > { %1219 = vrot.lane.b32.xlu0 %v306_v10, %s1616_s27 }
  0x4d   : > { %1221 = vrot.lane.b32.xlu1 %v314_v14, %s1616_s27 }
  0x50   : > { %1223 = vrot.lane.b32.xlu0 %v313_v15, %s1616_s27 }
  0x51   : > { %1225 = vrot.lane.b32.xlu1 %v315_v19, %s1616_s27  ;;  %v1415_v19 = vld [vmem:[%s1783_s1 + $0x14] sm:$0xf] }
  0x54   : > { %175 = vperm.xlu0 %1594, %v172_v22  }
  0x85   : > { %v317_v23 = vpop.permute.xlu0 %316 }
  0x87   : > { %v321_v24 = vpop.permute.xlu1 %320 }
  0x89   : > { %v319_v25 = vpop.permute.xlu0 %318 }
  0x8a   : > { %v325_v26 = vsel %vm324_vm3, %v317_v23, %v319_v25  ;;  %v326_v27 = vsel %vm324_vm3, %v319_v25, %v321_v24 }
  0x8b   : > { %v332_v28 = vsel %vm201_vm1, %v325_v26, 0  ;;  %v323_v29 = vpop.permute.xlu1 %322  ;;  %1400 = vmatprep.subr.msk.bf16.mxu0 %vm201_vm1, %v326_v27 }
  0x8c   : > { %v327_v30 = vsel %vm324_vm3, %v321_v24, %v323_v29  ;;  %341 = vmatpush1.bf16.msra.mxu0 %v332_v28  ;;  %v1419_v29 = vld [vmem:[%s1783_s1 + $0x18] sm:$0xf] }
  0x8d   : > { %v338_v32 = vsel %vm201_vm1, %v327_v30, 0 }
  0x8e   : > { %v446_v33 = vpop.permute.xlu0 %445  ;;  %1459 = vmatpush3.bf16.msra.mxu1 %v338_v32 }
  0x8f   : > { %1401 = vmatmul.mubr.msk.bf16.vlgmr.msra.gmra.mrb[0].mxu0 %vm197_vm2, %v1399_v31  ;;  %v448_v34 = vpop.permute.xlu1 %447  ;;  %1464 = vmatprep.subr.bf16.mxu1 %v1606_v3 }
  0x90   : > { %v454_v35 = vsel %vm453_vm4, %v446_v33, %v448_v34  ;;  %501 = vmatprep.mubr.bf16.mxu0 %v1607_v5 }
  0x91   : > { %1461 = vmatmul.mubr.msk.bf16.vlgmr.msra.gmra.mrb[0].mxu1 %vm197_vm2, %v1399_v31  ;;  %v461_v37 = vsel %vm201_vm1, %v454_v35, 0 }
  0x92   : > { %v450_v36 = vpop.permute.xlu0 %449  ;;  %1466 = vmatprep.mubr.msk.bf16.mxu1 %vm1608_vm0, %v1606_v3 }
  0x93   : > { %v455_v38 = vsel %vm453_vm4, %v448_v34, %v450_v36  ;;  %v452_v39 = vpop.permute.xlu1 %451 }
  0x94   : > { %1404 = vmatprep.subr.msk.bf16.mxu0 %vm201_vm1, %v455_v38  ;;  %v456_v40 = vsel %vm453_vm4, %v450_v36, %v452_v39  ;;  %v1423_v36 = vld [vmem:[%s1783_s1 + $0x1c] sm:$0xf] }
  0x95   : > { %470 = vmatpush1.bf16.msra.mxu0 %v461_v37  ;;  %v467_v41 = vsel %vm201_vm1, %v456_v40, 0  ;;  %v1427_v40 = vld [vmem:[%s1783_s1 + $0x20] sm:$0xf] }
  0x96   : > { %v575_v42 = vpop.permute.xlu0 %574  ;;  %1465 = vmatpush3.bf16.msra.mxu1 %v467_v41 }
  0x97   : > { %v577_v43 = vpop.permute.xlu1 %576  ;;  %1470 = vmatprep.subr.bf16.mxu1 %v1606_v3 }
  0x98   : > { %v583_v45 = vsel %vm582_vm5, %v575_v42, %v577_v43 }
  0x99   : > { %v590_v47 = vsel %vm201_vm1, %v583_v45, 0 }
  0x9a   : > { %v579_v46 = vpop.permute.xlu0 %578 }
  0x9b   : > { %v584_v48 = vsel %vm582_vm5, %v577_v43, %v579_v46  ;;  %1405 = vmatmul.mubr.msk.bf16.vlgmr.msra.gmra.mrb[0].mxu0 %vm197_vm2, %v1403_v44  ;;  %v581_v49 = vpop.permute.xlu1 %580 }
  0x9c   : > { %1408 = vmatprep.subr.msk.bf16.mxu0 %vm201_vm1, %v584_v48  ;;  %v585_v50 = vsel %vm582_vm5, %v579_v46, %v581_v49  ;;  %630 = vmatprep.mubr.bf16.mxu0 %v1607_v5 }
  0x9d   : > { %599 = vmatpush1.bf16.msra.mxu0 %v590_v47  ;;  %1467 = vmatmul.mubr.msk.bf16.vlgmr.msra.gmra.mrb[0].mxu1 %vm197_vm2, %v1403_v44  ;;  %v596_v51 = vsel %vm201_vm1, %v585_v50, 0 }
  0x9e   : > { %v704_v52 = vpop.permute.xlu0 %703  ;;  %1471 = vmatpush3.bf16.msra.mxu1 %v596_v51  ;;  %1472 = vmatprep.mubr.msk.bf16.mxu1 %vm1608_vm0, %v1606_v3 }
  0x9f   : > { %v706_v53 = vpop.permute.xlu1 %705  ;;  %1476 = vmatprep.subr.bf16.mxu1 %v1606_v3 }
  0xa0   : > { %v712_v55 = vsel %vm711_vm6, %v704_v52, %v706_v53 }
  0xa1   : > { %v719_v60 = vsel %vm201_vm1, %v712_v55, 0 }
  0xa2   : > { %v708_v54 = vpop.permute.xlu0 %707 }
  0xa3   : > { %v713_v56 = vsel %vm711_vm6, %v706_v53, %v708_v54  ;;  %v710_v57 = vpop.permute.xlu1 %709 }
  0xa4   : > { %1412 = vmatprep.subr.msk.bf16.mxu0 %vm201_vm1, %v713_v56  ;;  %v714_v59 = vsel %vm711_vm6, %v708_v54, %v710_v57 }
  0xa5   : > { %v725_v62 = vsel %vm201_vm1, %v714_v59, 0 }
  0xa6   : > { %v833_v61 = vpop.permute.xlu0 %832 }
  0xa7   : > { %1409 = vmatmul.mubr.msk.bf16.vlgmr.msra.gmra.mrb[0].mxu0 %vm197_vm2, %v1407_v58  ;;  %v835_v63 = vpop.permute.xlu1 %834 }
  0xa8   : > { %728 = vmatpush1.bf16.msra.mxu0 %v719_v60  ;;  %759 = vmatprep.mubr.bf16.mxu0 %v1607_v5  ;;  %v841_v6 = vsel %vm840_vm7, %v833_v61, %v835_v63 }
  0xa9   : > { %1473 = vmatmul.mubr.msk.bf16.vlgmr.msra.gmra.mrb[0].mxu1 %vm197_vm2, %v1407_v58  ;;  %v848_v10 = vsel %vm201_vm1, %v841_v6, 0 }
  0xaa   : > { %v837_v0 = vpop.permute.xlu0 %836  ;;  %1477 = vmatpush3.bf16.msra.mxu1 %v725_v62  ;;  %1478 = vmatprep.mubr.msk.bf16.mxu1 %vm1608_vm0, %v1606_v3 }
  0xab   : > { %v842_v1 = vsel %vm840_vm7, %v835_v63, %v837_v0  ;;  %v839_v2 = vpop.permute.xlu1 %838  ;;  %1482 = vmatprep.subr.bf16.mxu1 %v1606_v3 }
  0xac   : > { %1416 = vmatprep.subr.msk.bf16.mxu0 %vm201_vm1, %v842_v1  ;;  %v843_v9 = vsel %vm840_vm7, %v837_v0, %v839_v2 }
  0xad   : > { %v854_v13 = vsel %vm201_vm1, %v843_v9, 0 }
  0xae   : > { %v962_v4 = vpop.permute.xlu0 %961 }
  0xaf   : > { %v964_v7 = vpop.permute.xlu1 %963 }
  0xb0   : > { %v970_v16 = vsel %vm969_vm8, %v962_v4, %v964_v7 }
  0xb1   : > { %v977_v21 = vsel %vm201_vm1, %v970_v16, 0 }
  0xb2   : > { %v966_v11 = vpop.permute.xlu0 %965 }
  0xb3   : > { %v971_v12 = vsel %vm969_vm8, %v964_v7, %v966_v11  ;;  %1413 = vmatmul.mubr.msk.bf16.vlgmr.msra.gmra.mrb[0].mxu0 %vm197_vm2, %v1411_v8  ;;  %v968_v15 = vpop.permute.xlu1 %967 }
  0xb4   : > { %857 = vmatpush1.bf16.msra.mxu0 %v848_v10  ;;  %888 = vmatprep.mubr.bf16.mxu0 %v1607_v5  ;;  %v972_v20 = vsel %vm969_vm8, %v966_v11, %v968_v15 }
  0xb5   : > { %1479 = vmatmul.mubr.msk.bf16.vlgmr.msra.gmra.mrb[0].mxu1 %vm197_vm2, %v1411_v8  ;;  %1420 = vmatprep.subr.msk.bf16.mxu0 %vm201_vm1, %v971_v12  ;;  %v983_v23 = vsel %vm201_vm1, %v972_v20, 0 }
  0xb6   : > { %v1091_v14 = vpop.permute.xlu0 %1090  ;;  %1483 = vmatpush3.bf16.msra.mxu1 %v854_v13  ;;  %1484 = vmatprep.mubr.msk.bf16.mxu1 %vm1608_vm0, %v1606_v3 }
  0xb7   : > { %1488 = vmatprep.subr.bf16.mxu1 %v1606_v3  ;;  %v1093_v18 = vpop.permute.xlu1 %1092 }
  0xb8   : > { %v1099_v26 = vsel %vm1098_vm9, %v1091_v14, %v1093_v18 }
  0xb9   : > { %v1106_v31 = vsel %vm201_vm1, %v1099_v26, 0 }
  0xba   : > { %v1095_v17 = vpop.permute.xlu0 %1094 }
  0xbb   : > { %v1100_v22 = vsel %vm1098_vm9, %v1093_v18, %v1095_v17  ;;  %v1097_v25 = vpop.permute.xlu1 %1096 }
  0xbc   : > { %v1101_v30 = vsel %vm1098_vm9, %v1095_v17, %v1097_v25 }
  0xbd   : > { %v1112_v33 = vsel %vm201_vm1, %v1101_v30, 0 }
  0xbe   : > { %v1220_v24 = vpop.permute.xlu0 %1219 }
  0xbf   : > { %1417 = vmatmul.mubr.msk.bf16.vlgmr.msra.gmra.mrb[0].mxu0 %vm197_vm2, %v1415_v19  ;;  %v1222_v28 = vpop.permute.xlu1 %1221 }
  0xc0   : > { %986 = vmatpush1.bf16.msra.mxu0 %v977_v21  ;;  %1017 = vmatprep.mubr.bf16.mxu0 %v1607_v5  ;;  %v1228_v35 = vsel %vm1227_vm10, %v1220_v24, %v1222_v28 }
  0xc1   : > { %1485 = vmatmul.mubr.msk.bf16.vlgmr.msra.gmra.mrb[0].mxu1 %vm197_vm2, %v1415_v19  ;;  %1424 = vmatprep.subr.msk.bf16.mxu0 %vm201_vm1, %v1100_v22  ;;  %v1235_v38 = vsel %vm201_vm1, %v1228_v35, 0 }
  0xc2   : > { %1489 = vmatpush3.bf16.msra.mxu1 %v983_v23  ;;  %1490 = vmatprep.mubr.msk.bf16.mxu1 %vm1608_vm0, %v1606_v3  ;;  %v1224_v27 = vpop.permute.xlu0 %1223 }
  0xc3   : > { %1494 = vmatprep.subr.bf16.mxu1 %v1606_v3  ;;  %v1229_v32 = vsel %vm1227_vm10, %v1222_v28, %v1224_v27  ;;  %v1226_v34 = vpop.permute.xlu1 %1225 }
  0xc4   : > { %v1230_v37 = vsel %vm1227_vm10, %v1224_v27, %v1226_v34 }
  0xc5   : > { %v1241_v39 = vsel %vm201_vm1, %v1230_v37, 0 }
  0xcb   : > { %1421 = vmatmul.mubr.msk.bf16.vlgmr.msra.gmra.mrb[0].mxu0 %vm197_vm2, %v1419_v29 }
  0xcc   : > { %1115 = vmatpush1.bf16.msra.mxu0 %v1106_v31  ;;  %1146 = vmatprep.mubr.bf16.mxu0 %v1607_v5 }
  0xcd   : > { %1491 = vmatmul.mubr.msk.bf16.vlgmr.msra.gmra.mrb[0].mxu1 %vm197_vm2, %v1419_v29  ;;  %1428 = vmatprep.subr.msk.bf16.mxu0 %vm201_vm1, %v1229_v32 }
  0xce   : > { %1495 = vmatpush3.bf16.msra.mxu1 %v1112_v33  ;;  %1496 = vmatprep.mubr.msk.bf16.mxu1 %vm1608_vm0, %v1606_v3 }
  0xcf   : > { %1500 = vmatprep.subr.bf16.mxu1 %v1606_v3 }
  0xd3   : > { %v176_v41 = vpop.permute.xlu0 %175 }
  0xd7   : > { %1425 = vmatmul.mubr.msk.bf16.vlgmr.msra.gmra.mrb[0].mxu0 %vm197_vm2, %v1423_v36 }
  0xd8   : > { %1244 = vmatpush1.bf16.msra.mxu0 %v1235_v38  ;;  %1275 = vmatprep.mubr.bf16.mxu0 %v1607_v5 }
  0xd9   : > { %1497 = vmatmul.mubr.msk.bf16.vlgmr.msra.gmra.mrb[0].mxu1 %vm197_vm2, %v1423_v36 }
  0xda   : > { %1501 = vmatpush3.bf16.msra.mxu1 %v1241_v39  ;;  %1502 = vmatprep.mubr.msk.bf16.mxu1 %vm1608_vm0, %v1606_v3 }
  0xe3   : > { %1429 = vmatmul.mubr.msk.bf16.vlgmr.msra.gmra.mrb[0].mxu0 %vm197_vm2, %v1427_v40 }
  0xe5   : > { %1503 = vmatmul.mubr.msk.bf16.vlgmr.msra.gmra.mrb[0].mxu1 %vm197_vm2, %v1427_v40 }
 0x1b6   : > { %v1277_v42 = vpop.f32.mrb[0].mxu0 }
 0x1b7   : > { %v1506_v43 = vadd.f32 %v1277_v42, %v176_v41  ;;  %v1279_v44 = vpop.f32.mrb[1].mxu0 }
 0x1b8   : > { %v1507_v5 = vadd.f32 %v1279_v44, %v176_v41  ;;  %v1281_v45 = vpop.f32.mrb[2].mxu0  ;;  %v1318_v3 = vpop.f32.mrb[0].mxu1 }
 0x1b9   : > { %v1327_v46 = vmax.f32 %v1506_v43, 0.0  ;;  %v1508_v47 = vadd.f32 %v1318_v3, %v176_v41  ;;  %v1282_v48 = vpop.f32.mrb[3].mxu0  ;;  %v1504_v49 = vpop.f32.mrb[1].mxu1 }
 0x1ba   : > { %v1328_v50 = vmax.f32 %v1507_v5, 0.0  ;;  %v1321_v51 = vpop.f32.mrb[2].mxu1 }
 0x1bb   : > { %1330 = vst [vmem:[%s170_s24] sm:$0xff] %v1327_v46  ;;  %v1329_v52 = vmax.f32 %v1508_v47, 0.0  ;;  %v1505_v53 = vpop.f32.mrb[3].mxu1 }
 0x1bc   : > { %1331 = vst [vmem:[%s170_s24 + $0x8] sm:$0xff] %v1328_v50 }
 0x1bd   : > { %1332 = vst [vmem:[%s170_s24 + $0x10] sm:$0xff] %v1329_v52 }
 0x1be PF: > { %s13_s12 = sadd.s32 1, %s1603_s12  }
 0x1bf   : > { %p10_p4 = scmp.ge.s32.totalorder %s13_s12, 4  }
 0x1c1   :  { %12 = sbr.rel (!%p10_p4) target bundleno = 1 (0x1), region = 70 }

</bundles_post_ra>
